<compile_context>
chip_gen: v7x
topology: tpu7x:2x2x1
jax: 0.10.0
libtpu: 0.0.40
codegen_flags: <defaults>
</compile_context>

<pallas_src>
import functools

import jax
import jax.numpy as jnp
from jax.experimental import pallas as pl
from jax.experimental.pallas import tpu as pltpu

LANE = 128          # TPU vreg lane width; feature dims padded to this.
SUBLANE = 8         # f32 sublane height; batch tile aligned to this.
MAX_BATCH_TILE = 512  # rows per grid step (keeps VMEM use bounded for big B).


def _round_up(n, m):
    return ((n + m - 1) // m) * m


def _mlp_kernel(x_ref, *refs):
    """Fused MLP over one batch tile.

    refs = (w0, b0, w1, b1, ..., wL-1, bL-1, out).  All refs are VMEM blocks.
    Layers are unrolled statically.  Matmul operands are bf16 (MXU-native on
    v6e/v7x) with f32 accumulation; bias add + ReLU stay in f32 on the VPU.
    """
    o_ref = refs[-1]
    wb = refs[:-1]
    n_layers = len(wb) // 2

    h_bf16 = x_ref[...].astype(jnp.bfloat16)           # (TB, Din)
    h = None
    for i in range(n_layers):
        w = wb[2 * i][...]                              # bf16 (Din_i, Dout_i_pad)
        b = wb[2 * i + 1][...]                          # f32  (1,     Dout_i_pad)
        y = jnp.dot(h_bf16, w, preferred_element_type=jnp.float32)
        h = jnp.maximum(y + b, 0.0)                     # f32 epilogue (ReLU)
        if i + 1 < n_layers:
            h_bf16 = h.astype(jnp.bfloat16)
    o_ref[...] = h.astype(o_ref.dtype)


def feedforward_fused(x, params_flat, output_size):
    """Whole forward pass in one pallas_call; returns (B, output_size)."""
    B, din = x.shape
    out_pad = params_flat[-1].shape[-1]   # lane-padded width of last layer

    # Batch tiling: sublane-aligned tile, capped so VMEM stays small.
    tb = min(MAX_BATCH_TILE, _round_up(B, SUBLANE))
    b_pad = _round_up(B, tb)
    if b_pad != B:
        x = jnp.pad(x, ((0, b_pad - B), (0, 0)))
    grid = (pl.cdiv(b_pad, tb),)

    in_specs = [pl.BlockSpec((tb, din), lambda i: (i, 0))]
    for p in params_flat:
        # Whole-array block with a constant index_map: stays resident in VMEM
        # across the batch grid (no re-DMA per step).
        in_specs.append(pl.BlockSpec(p.shape, lambda i: (0, 0)))
    out_spec = pl.BlockSpec((tb, out_pad), lambda i: (i, 0))

    out_padded = pl.pallas_call(
        _mlp_kernel,
        out_shape=jax.ShapeDtypeStruct((b_pad, out_pad), jnp.float32),
        grid=grid,
        in_specs=in_specs,
        out_specs=out_spec,
        compiler_params=pltpu.CompilerParams(
            dimension_semantics=("parallel",)),
    )(x, *params_flat)
    return out_padded[:B, :output_size]


def init_feedforward_params(key, input_size, units, n_hidden, output_size,
                            dtype=jnp.float32):
    """Deterministic synthetic f32 parameters matching the module's shapes.

    Layers: [in->units] + (n_hidden-1)*[units->units] + [units->output_size].
    Weights are (in_features, out_features) so y = x @ W + b.
    """
    dims = [input_size] + [units] * n_hidden + [output_size]
    params = []
    for i in range(len(dims) - 1):
        key, kw, kb = jax.random.split(key, 3)
        fan_in = dims[i]
        scale = 1.0 / jnp.sqrt(jnp.asarray(fan_in, dtype))
        w = jax.random.uniform(kw, (dims[i], dims[i + 1]), dtype,
                               minval=-scale, maxval=scale)
        b = jax.random.uniform(kb, (1, dims[i + 1]), dtype,
                               minval=-scale, maxval=scale)
        params.append((w, b))
    return params


def pad_params_for_kernel(params_f32):
    """Lane-pad output dims to a multiple of 128; weights -> bf16, biases f32.

    Padded W columns / b lanes are zero, so padded output lanes are exactly
    zero after ReLU and contribute nothing to subsequent layers.
    """
    padded = []
    prev_out_pad = None
    for idx, (w, b) in enumerate(params_f32):
        din, dout = w.shape
        din_pad = din if idx == 0 else prev_out_pad
        dout_pad = _round_up(dout, LANE)
        w_pad = jnp.zeros((din_pad, dout_pad), jnp.bfloat16)
        w_pad = w_pad.at[:din, :dout].set(w.astype(jnp.bfloat16))
        b_pad = jnp.zeros((1, dout_pad), jnp.float32)
        b_pad = b_pad.at[:, :dout].set(b.astype(jnp.float32))
        padded += [w_pad, b_pad]
        prev_out_pad = dout_pad
    return tuple(padded)


if __name__ == "__main__":
    # Small shapes consistent with the module's forward:
    #   batch=8, input_size=8, units=32, n_hidden=3, output_size=16
    batch = 8
    input_size = 8
    units = 32
    n_hidden = 3
    output_size = 16

    key = jax.random.PRNGKey(0)
    key, kx = jax.random.split(key)
    x = jax.random.normal(kx, (batch, input_size), jnp.float32)

    params_f32 = init_feedforward_params(key, input_size, units, n_hidden,
                                         output_size)
    params_kernel = pad_params_for_kernel(params_f32)

    fwd = jax.jit(functools.partial(feedforward_fused,
                                    output_size=output_size))
    out = fwd(x, params_kernel)
    out = jax.block_until_ready(out)

    # Reference in plain f32 JAX (same math: ReLU after every linear).
    # Tolerance is loose because the kernel feeds the MXU bf16 operands.
    ref = x
    for w, b in params_f32:
        ref = jnp.maximum(ref @ w + b, 0.0)

    assert out.shape == (batch, output_size)
    max_err = float(jnp.max(jnp.abs(out - ref)))
    assert jnp.allclose(out, ref, atol=5e-2, rtol=5e-2), max_err

    print("KERNEL_OK")
</pallas_src>

<mosaic_0001>
module attributes {stable_mosaic.version = 11 : i64} {
  func.func @_mlp_kernel(%arg0: i32, %arg1: memref<8x8xf32, #tpu.memory_space<vmem>>, %arg2: memref<8x128xbf16, #tpu.memory_space<vmem>>, %arg3: memref<1x128xf32, #tpu.memory_space<vmem>>, %arg4: memref<128x128xbf16, #tpu.memory_space<vmem>>, %arg5: memref<1x128xf32, #tpu.memory_space<vmem>>, %arg6: memref<128x128xbf16, #tpu.memory_space<vmem>>, %arg7: memref<1x128xf32, #tpu.memory_space<vmem>>, %arg8: memref<128x128xbf16, #tpu.memory_space<vmem>>, %arg9: memref<1x128xf32, #tpu.memory_space<vmem>>, %arg10: memref<8x128xf32, #tpu.memory_space<vmem>>) attributes {dimension_semantics = [#tpu.dimension_semantics<parallel>], iteration_bounds = array<i64: 1>, scalar_prefetch = 0 : i64, scratch_operands = 0 : i64, tpu.core_type = #tpu.core_type<tc>, window_params = [{transform_indices = @transform_0, window_bounds = array<i64: 8, 8>}, {pipeline_mode = #tpu.pipeline_mode<synchronous>, transform_indices = @transform_1, window_bounds = array<i64: 8, 128>}, {pipeline_mode = #tpu.pipeline_mode<synchronous>, transform_indices = @transform_2, window_bounds = array<i64: 1, 128>}, {pipeline_mode = #tpu.pipeline_mode<synchronous>, transform_indices = @transform_3, window_bounds = array<i64: 128, 128>}, {pipeline_mode = #tpu.pipeline_mode<synchronous>, transform_indices = @transform_4, window_bounds = array<i64: 1, 128>}, {pipeline_mode = #tpu.pipeline_mode<synchronous>, transform_indices = @transform_5, window_bounds = array<i64: 128, 128>}, {pipeline_mode = #tpu.pipeline_mode<synchronous>, transform_indices = @transform_6, window_bounds = array<i64: 1, 128>}, {pipeline_mode = #tpu.pipeline_mode<synchronous>, transform_indices = @transform_7, window_bounds = array<i64: 128, 128>}, {pipeline_mode = #tpu.pipeline_mode<synchronous>, transform_indices = @transform_8, window_bounds = array<i64: 1, 128>}, {transform_indices = @transform_9, window_bounds = array<i64: 8, 128>}]} {
    %c0 = arith.constant 0 : index
    %c0_0 = arith.constant 0 : index
    %0 = vector.load %arg1[%c0, %c0_0] : memref<8x8xf32, #tpu.memory_space<vmem>>, vector<8x8xf32>
    %1 = arith.truncf %0 : vector<8x8xf32> to vector<8x8xbf16>
    %c0_1 = arith.constant 0 : index
    %c0_2 = arith.constant 0 : index
    %2 = vector.load %arg2[%c0_1, %c0_2] : memref<8x128xbf16, #tpu.memory_space<vmem>>, vector<8x128xbf16>
    %c0_3 = arith.constant 0 : index
    %c0_4 = arith.constant 0 : index
    %3 = vector.load %arg3[%c0_3, %c0_4] : memref<1x128xf32, #tpu.memory_space<vmem>>, vector<1x128xf32>
    %cst = arith.constant dense<0.000000e+00> : vector<8x128xf32>
    %4 = tpu.matmul %1, %2, %cst {dimension_numbers = #tpu.dot_dimension_numbers<[1], [0], [0], [1], [0, 0, 1, 1], [], []>} : vector<8x8xbf16>, vector<8x128xbf16>, vector<8x128xf32> -> vector<8x128xf32>
    %5 = vector.broadcast %3 : vector<1x128xf32> to vector<8x128xf32>
    %6 = arith.addf %4, %5 : vector<8x128xf32>
    %cst_5 = arith.constant 0.000000e+00 : f32
    %7 = vector.broadcast %cst_5 : f32 to vector<8x128xf32>
    %8 = arith.maximumf %6, %7 : vector<8x128xf32>
    %9 = arith.truncf %8 : vector<8x128xf32> to vector<8x128xbf16>
    %c0_6 = arith.constant 0 : index
    %c0_7 = arith.constant 0 : index
    %10 = vector.load %arg4[%c0_6, %c0_7] : memref<128x128xbf16, #tpu.memory_space<vmem>>, vector<128x128xbf16>
    %c0_8 = arith.constant 0 : index
    %c0_9 = arith.constant 0 : index
    %11 = vector.load %arg5[%c0_8, %c0_9] : memref<1x128xf32, #tpu.memory_space<vmem>>, vector<1x128xf32>
    %cst_10 = arith.constant dense<0.000000e+00> : vector<8x128xf32>
    %12 = tpu.matmul %9, %10, %cst_10 {dimension_numbers = #tpu.dot_dimension_numbers<[1], [0], [0], [1], [0, 0, 1, 1], [], []>} : vector<8x128xbf16>, vector<128x128xbf16>, vector<8x128xf32> -> vector<8x128xf32>
    %13 = vector.broadcast %11 : vector<1x128xf32> to vector<8x128xf32>
    %14 = arith.addf %12, %13 : vector<8x128xf32>
    %cst_11 = arith.constant 0.000000e+00 : f32
    %15 = vector.broadcast %cst_11 : f32 to vector<8x128xf32>
    %16 = arith.maximumf %14, %15 : vector<8x128xf32>
    %17 = arith.truncf %16 : vector<8x128xf32> to vector<8x128xbf16>
    %c0_12 = arith.constant 0 : index
    %c0_13 = arith.constant 0 : index
    %18 = vector.load %arg6[%c0_12, %c0_13] : memref<128x128xbf16, #tpu.memory_space<vmem>>, vector<128x128xbf16>
    %c0_14 = arith.constant 0 : index
    %c0_15 = arith.constant 0 : index
    %19 = vector.load %arg7[%c0_14, %c0_15] : memref<1x128xf32, #tpu.memory_space<vmem>>, vector<1x128xf32>
    %cst_16 = arith.constant dense<0.000000e+00> : vector<8x128xf32>
    %20 = tpu.matmul %17, %18, %cst_16 {dimension_numbers = #tpu.dot_dimension_numbers<[1], [0], [0], [1], [0, 0, 1, 1], [], []>} : vector<8x128xbf16>, vector<128x128xbf16>, vector<8x128xf32> -> vector<8x128xf32>
    %21 = vector.broadcast %19 : vector<1x128xf32> to vector<8x128xf32>
    %22 = arith.addf %20, %21 : vector<8x128xf32>
    %cst_17 = arith.constant 0.000000e+00 : f32
    %23 = vector.broadcast %cst_17 : f32 to vector<8x128xf32>
    %24 = arith.maximumf %22, %23 : vector<8x128xf32>
    %25 = arith.truncf %24 : vector<8x128xf32> to vector<8x128xbf16>
    %c0_18 = arith.constant 0 : index
    %c0_19 = arith.constant 0 : index
    %26 = vector.load %arg8[%c0_18, %c0_19] : memref<128x128xbf16, #tpu.memory_space<vmem>>, vector<128x128xbf16>
    %c0_20 = arith.constant 0 : index
    %c0_21 = arith.constant 0 : index
    %27 = vector.load %arg9[%c0_20, %c0_21] : memref<1x128xf32, #tpu.memory_space<vmem>>, vector<1x128xf32>
    %cst_22 = arith.constant dense<0.000000e+00> : vector<8x128xf32>
    %28 = tpu.matmul %25, %26, %cst_22 {dimension_numbers = #tpu.dot_dimension_numbers<[1], [0], [0], [1], [0, 0, 1, 1], [], []>} : vector<8x128xbf16>, vector<128x128xbf16>, vector<8x128xf32> -> vector<8x128xf32>
    %29 = vector.broadcast %27 : vector<1x128xf32> to vector<8x128xf32>
    %30 = arith.addf %28, %29 : vector<8x128xf32>
    %cst_23 = arith.constant 0.000000e+00 : f32
    %31 = vector.broadcast %cst_23 : f32 to vector<8x128xf32>
    %32 = arith.maximumf %30, %31 : vector<8x128xf32>
    %c0_24 = arith.constant 0 : index
    %c0_25 = arith.constant 0 : index
    %33 = vector.load %arg10[%c0_24, %c0_25] : memref<8x128xf32, #tpu.memory_space<vmem>>, vector<8x128xf32>
    tpu.vector_store %arg10[%c0_24, %c0_25], %32 {strides = array<i32>} : memref<8x128xf32, #tpu.memory_space<vmem>>, vector<8x128xf32>,
    return
  }
  func.func @transform_0(%arg0: i32) -> (i32, i32) {
    %c0_i32 = arith.constant 0 : i32
    %c0_i32_0 = arith.constant 0 : i32
    return %arg0, %c0_i32 : i32, i32
  }
  func.func @transform_1(%arg0: i32) -> (i32, i32) {
    %c0_i32 = arith.constant 0 : i32
    %c0_i32_0 = arith.constant 0 : i32
    %c0_i32_1 = arith.constant 0 : i32
    return %c0_i32, %c0_i32_0 : i32, i32
  }
  func.func @transform_2(%arg0: i32) -> (i32, i32) {
    %c0_i32 = arith.constant 0 : i32
    %c0_i32_0 = arith.constant 0 : i32
    %c0_i32_1 = arith.constant 0 : i32
    return %c0_i32, %c0_i32_0 : i32, i32
  }
  func.func @transform_3(%arg0: i32) -> (i32, i32) {
    %c0_i32 = arith.constant 0 : i32
    %c0_i32_0 = arith.constant 0 : i32
    %c0_i32_1 = arith.constant 0 : i32
    return %c0_i32, %c0_i32_0 : i32, i32
  }
  func.func @transform_4(%arg0: i32) -> (i32, i32) {
    %c0_i32 = arith.constant 0 : i32
    %c0_i32_0 = arith.constant 0 : i32
    %c0_i32_1 = arith.constant 0 : i32
    return %c0_i32, %c0_i32_0 : i32, i32
  }
  func.func @transform_5(%arg0: i32) -> (i32, i32) {
    %c0_i32 = arith.constant 0 : i32
    %c0_i32_0 = arith.constant 0 : i32
    %c0_i32_1 = arith.constant 0 : i32
    return %c0_i32, %c0_i32_0 : i32, i32
  }
  func.func @transform_6(%arg0: i32) -> (i32, i32) {
    %c0_i32 = arith.constant 0 : i32
    %c0_i32_0 = arith.constant 0 : i32
    %c0_i32_1 = arith.constant 0 : i32
    return %c0_i32, %c0_i32_0 : i32, i32
  }
  func.func @transform_7(%arg0: i32) -> (i32, i32) {
    %c0_i32 = arith.constant 0 : i32
    %c0_i32_0 = arith.constant 0 : i32
    %c0_i32_1 = arith.constant 0 : i32
    return %c0_i32, %c0_i32_0 : i32, i32
  }
  func.func @transform_8(%arg0: i32) -> (i32, i32) {
    %c0_i32 = arith.constant 0 : i32
    %c0_i32_0 = arith.constant 0 : i32
    %c0_i32_1 = arith.constant 0 : i32
    return %c0_i32, %c0_i32_0 : i32, i32
  }
  func.func @transform_9(%arg0: i32) -> (i32, i32) {
    %c0_i32 = arith.constant 0 : i32
    %c0_i32_0 = arith.constant 0 : i32
    return %arg0, %c0_i32 : i32, i32
  }
}

</mosaic_0001>

<bundles_post_ra>
// kernel: feedforward_fused.1
= control target key start
LH: loop header
LB: loop body
LE: loop exit
PB: predicated region body
PF: predicated region fallthrough
CT: control target
= control target key end

     0   :  { %14 = vsyncpa [#allocation3], 0  ;;  %s998_s0 = inlined_call_operand.hbm [shape: f32[8,8], index: 0, kind: input, shape index: {}]   ;;  %s999_s1 = inlined_call_operand.hbm [shape: bf16[8,128], index: 1, kind: input, shape index: {}]   ;;  %s1000_s2 = inlined_call_operand.vmem [shape: f32[1,128], index: 2, kind: input, shape index: {}]   ;;  %s1001_s3 = inlined_call_operand.hbm [shape: bf16[128,128], index: 3, kind: input, shape index: {}]   ;;  %s1002_s4 = inlined_call_operand.vmem [shape: f32[1,128], index: 4, kind: input, shape index: {}]   ;;  %s1003_s5 = inlined_call_operand.hbm [shape: bf16[128,128], index: 5, kind: input, shape index: {}]   ;;  %s1004_s6 = inlined_call_operand.vmem [shape: f32[1,128], index: 6, kind: input, shape index: {}]   ;;  %s1005_s7 = inlined_call_operand.hbm [shape: bf16[128,128], index: 7, kind: input, shape index: {}]   ;;  %s1006_s8 = inlined_call_operand.vmem [shape: f32[1,128], index: 8, kind: input, shape index: {}]   ;;  %s1007_s9 = inlined_call_operand.hbm [shape: f32[8,128], index: 9, kind: output, shape index: {}]  }
   0x1   :  { %15 = vsyncpa [#allocation6], 0 }
   0x2   :  { %16 = vsyncpa [#allocation9], 0 }
   0x3   :  { %17 = vsyncpa [#allocation4], 0  ;;  %s812_s30 = smov [#allocation5]   ;;  %s672_s13 = scalar_lea.hbm %s999_s1, 64 }
   0x4   :  { %s34_s10 = sshll.u32 %s812_s30, 4  ;;  %p673_p0 = scmp.ne.s32.totalorder %s999_s1, %s672_s13  ;;  %s35_s10 = int_to_ptr.vmem [resolvable:$true] %s34_s10 }
   0x5   :  { %p676_p1 = scmp.lt.u32.totalorder %s672_s13, %s999_s1 }
   0x7   :  { %p678_p2 = pnand %p676_p1, %p673_p0 }
   0x9   :  { %681 = shalt.err (!%p678_p2)
}
   0xa   :  { %s682_s18 = scalar_lea.vmem %s35_s10, 64  ;;  %p687_p4 = scmp.lt.s32.totalorder %s35_s10, %s35_s10 }
   0xb   :  { %p683_p3 = scmp.ne.s32.totalorder %s35_s10, %s682_s18  ;;  %p688_p5 = scmp.lt.s32.totalorder %s682_s18, %s682_s18 }
   0xd   :  { %p689_p6 = por %p688_p5, %p687_p4 }
   0xf   :  { %p690_p7 = pnand %p689_p6, %p683_p3 }
  0x11   :  { %693 = shalt.err (!%p690_p7)
}
  0x12   :  { %37 = dma.hbm_to_vmem [thread:$0]  %s999_s1, 64, %s35_s10, [#allocation6]  }
  0x13   :  { %s813_s21 = smov [#allocation8]   ;;  %s814_s23 = smov [#allocation2]  }
  0x14   :  { %s59_s22 = sshll.u32 %s813_s21, 4  ;;  %s24_s24 = sshll.u32 %s814_s23, 4  ;;  %s60_s22 = int_to_ptr.vmem [resolvable:$true] %s59_s22  ;;  %s25_s24 = int_to_ptr.vmem [resolvable:$true] %s24_s24 }
  0x15   :  { %s694_s27 = scalar_lea.hbm %s1003_s5, 1024 }
  0x16   :  { %p695_p8 = scmp.ne.s32.totalorder %s1003_s5, %s694_s27  ;;  %p698_p9 = scmp.lt.u32.totalorder %s694_s27, %s1003_s5 }
  0x18   :  { %p700_p10 = pnand %p698_p9, %p695_p8 }
  0x1a   :  { %703 = shalt.err (!%p700_p10)
}
  0x1b   :  { %s704_s1 = scalar_lea.vmem %s60_s22, 1024  ;;  %p709_p12 = scmp.lt.s32.totalorder %s60_s22, %s60_s22 }
  0x1c   :  { %p705_p11 = scmp.ne.s32.totalorder %s60_s22, %s704_s1  ;;  %p710_p13 = scmp.lt.s32.totalorder %s704_s1, %s704_s1 }
  0x1e   :  { %p711_p0 = por %p710_p13, %p709_p12 }
  0x20   :  { %p712_p1 = pnand %p711_p0, %p705_p11 }
  0x22   :  { %715 = shalt.err (!%p712_p1)
}
  0x23   :  { %s815_s10 = smov 64   ;;  %s816_s12 = smov 4  }
  0x24   :  { %65 = dma.hbm_to_vmem [thread:$0]  %s1003_s5, 1024, %s60_s22, [#allocation9], %s815_s10, %s815_s10, %s816_s12  }
  0x25   :  { %s716_s17 = scalar_lea.hbm %s998_s0, 128 }
  0x26   :  { %p717_p2 = scmp.ne.s32.totalorder %s998_s0, %s716_s17  ;;  %p720_p3 = scmp.lt.u32.totalorder %s716_s17, %s998_s0 }
  0x28   :  { %p722_p4 = pnand %p720_p3, %p717_p2 }
  0x2a   :  { %725 = shalt.err (!%p722_p4)
}
  0x2b   :  { %s726_s23 = scalar_lea.vmem %s25_s24, 128  ;;  %p731_p6 = scmp.lt.s32.totalorder %s25_s24, %s25_s24 }
  0x2c   :  { %p727_p5 = scmp.ne.s32.totalorder %s25_s24, %s726_s23  ;;  %p732_p7 = scmp.lt.s32.totalorder %s726_s23, %s726_s23 }
  0x2e   :  { %p733_p8 = por %p732_p7, %p731_p6 }
  0x30   :  { %p734_p9 = pnand %p733_p8, %p727_p5 }
  0x32   :  { %737 = shalt.err (!%p734_p9)
}
  0x33   :  { %27 = dma.hbm_to_vmem [thread:$0]  %s998_s0, 128, %s25_s24, [#allocation3]  }
  0x34   :  { %s817_s25 = smov [#allocation7]   ;;  %s818_s27 = smov [#allocation10]  }
  0x35   :  { %s45_s26 = sshll.u32 %s817_s25, 4  ;;  %s73_s28 = sshll.u32 %s818_s27, 4  ;;  %s46_s26 = int_to_ptr.vmem [resolvable:$true] %s45_s26  ;;  %s74_s28 = int_to_ptr.vmem [resolvable:$true] %s73_s28 }
  0x36   :  { %s738_s11 = scalar_lea.hbm %s1001_s3, 1024 }
  0x37   :  { %p739_p10 = scmp.ne.s32.totalorder %s1001_s3, %s738_s11  ;;  %p742_p11 = scmp.lt.u32.totalorder %s738_s11, %s1001_s3 }
  0x39   :  { %p744_p12 = pnand %p742_p11, %p739_p10 }
  0x3b   :  { %747 = shalt.err (!%p744_p12)
}
  0x3c   :  { %s748_s0 = scalar_lea.vmem %s46_s26, 1024  ;;  %p753_p0 = scmp.lt.s32.totalorder %s46_s26, %s46_s26 }
  0x3d   :  { %p749_p13 = scmp.ne.s32.totalorder %s46_s26, %s748_s0  ;;  %p754_p1 = scmp.lt.s32.totalorder %s748_s0, %s748_s0 }
  0x3f   :  { %p755_p2 = por %p754_p1, %p753_p0 }
  0x41   :  { %p756_p3 = pnand %p755_p2, %p749_p13 }
  0x43   :  { %759 = shalt.err (!%p756_p3)
}
  0x44   :  { %51 = dma.hbm_to_vmem [thread:$0]  %s1001_s3, 1024, %s46_s26, [#allocation6], %s815_s10, %s815_s10, %s816_s12  }
  0x45   :  { %s760_s19 = scalar_lea.hbm %s1005_s7, 1024 }
  0x46   :  { %p761_p4 = scmp.ne.s32.totalorder %s1005_s7, %s760_s19  ;;  %p764_p5 = scmp.lt.u32.totalorder %s760_s19, %s1005_s7 }
  0x48   :  { %p766_p6 = pnand %p764_p5, %p761_p4 }
  0x4a   :  { %769 = shalt.err (!%p766_p6)
}
  0x4b   :  { %s770_s22 = scalar_lea.vmem %s74_s28, 1024  ;;  %p775_p8 = scmp.lt.s32.totalorder %s74_s28, %s74_s28 }
  0x4c   :  { %p771_p7 = scmp.ne.s32.totalorder %s74_s28, %s770_s22  ;;  %p776_p9 = scmp.lt.s32.totalorder %s770_s22, %s770_s22 }
  0x4e   :  { %p777_p10 = por %p776_p9, %p775_p8 }
  0x50   :  { %p778_p11 = pnand %p777_p10, %p771_p7 }
  0x52   :  { %781 = shalt.err (!%p778_p11)
}
  0x53   :  { %79 = dma.hbm_to_vmem [thread:$0]  %s1005_s7, 1024, %s74_s28, [#allocation9], %s815_s10, %s815_s10, %s816_s12  }
  0x54   :  { %804 = dma.done.wait [#allocation3], 128  }
  0x55   :  { %805 = vsyncadd [#allocation3], 4294967168 }
  0x56   :  { %806 = dma.done.wait [#allocation6], 1088  }
  0x57   :  { %807 = vsyncadd [#allocation6], 4294966208 }
  0x58   :  { %808 = dma.done.wait [#allocation9], 2048  }
  0x59   :  { %809 = vsyncadd [#allocation9], 4294965248  ;;  %v819_v0 = vmov 0.0   ;;  %vm820_vm0 = vmmov 0   ;;  %vm112_vm1 = vcmask 1043456   ;;  %v98_v2 = vld [vmem:[#allocation2] sm:$0xff] }
  0x5a   :  { %572 = vmatprep.subr.bf16.mxu0 %v819_v0  ;;  %574 = vmatprep.mubr.msk.bf16.mxu0 %vm820_vm0, %v819_v0  ;;  %v100_v1 = vld [vmem:[#allocation5] sm:$0xf]  ;;  %v99_v4 = vpack.c.bf16 %v98_v2, %v98_v2  ;;  %v648_v5 = vld [vmem:[#allocation7] sm:$0xff]   ;;  %vm108_vm2 = vcmask 64512   ;;  %v649_v6 = vld [vmem:[#allocation7 + $0x8] sm:$0xff]   ;;  %s821_s29 = smov [#allocation11]  }
  0x5b   :  { %578 = vmatprep.subr.bf16.mxu1 %v819_v0  ;;  %594 = vmatprep.mubr.msk.bf16.mxu1 %vm820_vm0, %v819_v0  ;;  %v114_v3 = vsel %vm112_vm1, %v100_v1, 0  ;;  %v650_v7 = vld [vmem:[#allocation7 + $0x10] sm:$0xff]   ;;  %v651_v8 = vld [vmem:[#allocation7 + $0x18] sm:$0xff]   ;;  %v652_v9 = vld [vmem:[#allocation7 + $0x20] sm:$0xff]   ;;  %s503_s30 = sshll.u32 %s821_s29, 4  ;;  %s504_s30 = int_to_ptr.vmem [resolvable:$true] %s503_s30 }
  0x5c   :  { %573 = vmatpush3.bf16.msra.mxu0 %v114_v3  ;;  %579 = vmatpush3.bf16.msra.mxu1 %v648_v5  ;;  %v653_v10 = vld [vmem:[#allocation7 + $0x28] sm:$0xff]   ;;  %v654_v11 = vld [vmem:[#allocation7 + $0x30] sm:$0xff]   ;;  %v655_v12 = vld [vmem:[#allocation7 + $0x38] sm:$0xff]   ;;  %p787_p13 = scmp.lt.s32.totalorder %s504_s30, %s504_s30 }
  0x5d   :  { %598 = vmatprep.subr.bf16.mxu0 %v819_v0  ;;  %580 = vmatprep.subr.bf16.mxu1 %v819_v0  ;;  %v656_v13 = vld [vmem:[#allocation8] sm:$0xff]   ;;  %v657_v14 = vld [vmem:[#allocation8 + $0x8] sm:$0xff]   ;;  %v658_v15 = vld [vmem:[#allocation8 + $0x10] sm:$0xff]  }
  0x5e   :  { %v659_v16 = vld [vmem:[#allocation8 + $0x18] sm:$0xff]   ;;  %v660_v17 = vld [vmem:[#allocation8 + $0x20] sm:$0xff]   ;;  %v661_v18 = vld [vmem:[#allocation8 + $0x28] sm:$0xff]  }
  0x5f   :  { %575 = vmatmul.mubr.msk.bf16.vlgmr.msra.gmra.mrb[0].mxu0 %vm108_vm2, %v99_v4  ;;  %v514_v19 = vld [vmem:[%s1000_s2] ss:$0 sm:$0xff]  ;;  %v663_v28 = vld [vmem:[#allocation8 + $0x38] sm:$0xff]   ;;  %v664_v29 = vld [vmem:[#allocation10] sm:$0xff]  }
  0x60   :  { %614 = vmatprep.mubr.msk.bf16.mxu0 %vm820_vm0, %v819_v0  ;;  %581 = vmatpush3.bf16.msra.mxu1 %v649_v6  ;;  %v662_v27 = vld [vmem:[#allocation8 + $0x30] sm:$0xff]   ;;  %v665_v30 = vld [vmem:[#allocation10 + $0x8] sm:$0xff]   ;;  %v667_v32 = vld [vmem:[#allocation10 + $0x18] sm:$0xff]  }
  0x61   :  { %582 = vmatprep.subr.bf16.mxu1 %v819_v0  ;;  %599 = vmatpush3.bf16.msra.mxu0 %v656_v13  ;;  %v666_v31 = vld [vmem:[#allocation10 + $0x10] sm:$0xff]   ;;  %v668_v33 = vld [vmem:[#allocation10 + $0x20] sm:$0xff]   ;;  %v669_v34 = vld [vmem:[#allocation10 + $0x28] sm:$0xff]  }
  0x62   :  { %600 = vmatprep.subr.bf16.mxu0 %v819_v0  ;;  %v516_v35 = vld [vmem:[%s1002_s4] ss:$0 sm:$0xff]  ;;  %v671_v44 = vld [vmem:[#allocation10 + $0x38] sm:$0xff]  }
  0x63   :  { %v670_v43 = vld [vmem:[#allocation10 + $0x30] sm:$0xff]  }
  0x64   :  { %583 = vmatpush3.bf16.msra.mxu1 %v650_v7  ;;  %v525_v45 = vld [vmem:[%s1004_s6] ss:$0 sm:$0xff]  ;;  %s782_s6 = scalar_lea.vmem %s504_s30, 128 }
  0x65   :  { %584 = vmatprep.subr.bf16.mxu1 %v819_v0  ;;  %601 = vmatpush3.bf16.msra.mxu0 %v657_v14  ;;  %v534_v53 = vld [vmem:[%s1006_s8] ss:$0 sm:$0xff]  ;;  %p783_p12 = scmp.ne.s32.totalorder %s504_s30, %s782_s6  ;;  %p788_p0 = scmp.lt.s32.totalorder %s782_s6, %s782_s6 }
  0x66   :  { %602 = vmatprep.subr.bf16.mxu0 %v819_v0 }
  0x67   :  { %p789_p1 = por %p788_p0, %p787_p13 }
  0x68   :  { %585 = vmatpush3.bf16.msra.mxu1 %v651_v8 }
  0x69   :  { %586 = vmatprep.subr.bf16.mxu1 %v819_v0  ;;  %603 = vmatpush3.bf16.msra.mxu0 %v658_v15  ;;  %p790_p2 = pnand %p789_p1, %p783_p12 }
  0x6a   :  { %604 = vmatprep.subr.bf16.mxu0 %v819_v0 }
  0x6c   :  { %587 = vmatpush3.bf16.msra.mxu1 %v652_v9 }
  0x6d   :  { %588 = vmatprep.subr.bf16.mxu1 %v819_v0  ;;  %605 = vmatpush3.bf16.msra.mxu0 %v659_v16 }
  0x6e   :  { %606 = vmatprep.subr.bf16.mxu0 %v819_v0 }
  0x70   :  { %589 = vmatpush3.bf16.msra.mxu1 %v653_v10 }
  0x71   :  { %590 = vmatprep.subr.bf16.mxu1 %v819_v0  ;;  %607 = vmatpush3.bf16.msra.mxu0 %v660_v17 }
  0x72   :  { %608 = vmatprep.subr.bf16.mxu0 %v819_v0 }
  0x74   :  { %591 = vmatpush3.bf16.msra.mxu1 %v654_v11 }
  0x75   :  { %592 = vmatprep.subr.bf16.mxu1 %v819_v0  ;;  %609 = vmatpush3.bf16.msra.mxu0 %v661_v18 }
  0x76   :  { %610 = vmatprep.subr.bf16.mxu0 %v819_v0 }
  0x78   :  { %593 = vmatpush3.bf16.msra.mxu1 %v655_v12 }
  0x79   :  { %618 = vmatprep.subr.bf16.mxu1 %v819_v0  ;;  %611 = vmatpush3.bf16.msra.mxu0 %v662_v27 }
  0x7a   :  { %612 = vmatprep.subr.bf16.mxu0 %v819_v0 }
  0x7d   :  { %613 = vmatpush3.bf16.msra.mxu0 %v663_v28 }
 0x132   :  { %v150_v20 = vpop.f32.mrb[0].mxu0 }
 0x133   :  { %v151_v21 = vadd.f32 %v514_v19, %v150_v20  ;;  %v576_v22 = vpop.f32.mrb[1].mxu0 }
 0x134   :  { %v153_v23 = vpop.f32.mrb[2].mxu0 }
 0x135   :  { %v156_v24 = vmax.f32 %v151_v21, 0.0  ;;  %v577_v25 = vpop.f32.mrb[3].mxu0 }
 0x137   :  { %v157_v26 = vpack.c.bf16 %v156_v24, %v156_v24 }
 0x139   :  { %595 = vmatmul.mubr.bf16.vlgmr.msra.gmra.mrb[0].mxu1 %v157_v26 }
 0x13a   :  { %634 = vmatprep.mubr.msk.bf16.mxu1 %vm820_vm0, %v819_v0  ;;  %619 = vmatpush3.bf16.msra.mxu1 %v664_v29 }
 0x13b   :  { %620 = vmatprep.subr.bf16.mxu1 %v819_v0 }
 0x13e   :  { %621 = vmatpush3.bf16.msra.mxu1 %v665_v30 }
 0x13f   :  { %622 = vmatprep.subr.bf16.mxu1 %v819_v0 }
 0x142   :  { %623 = vmatpush3.bf16.msra.mxu1 %v666_v31 }
 0x143   :  { %624 = vmatprep.subr.bf16.mxu1 %v819_v0 }
 0x146   :  { %625 = vmatpush3.bf16.msra.mxu1 %v667_v32 }
 0x147   :  { %626 = vmatprep.subr.bf16.mxu1 %v819_v0 }
 0x14a   :  { %627 = vmatpush3.bf16.msra.mxu1 %v668_v33 }
 0x14b   :  { %628 = vmatprep.subr.bf16.mxu1 %v819_v0 }
 0x14e   :  { %629 = vmatpush3.bf16.msra.mxu1 %v669_v34 }
 0x14f   :  { %630 = vmatprep.subr.bf16.mxu1 %v819_v0 }
 0x152   :  { %631 = vmatpush3.bf16.msra.mxu1 %v670_v43 }
 0x153   :  { %632 = vmatprep.subr.bf16.mxu1 %v819_v0 }
 0x156   :  { %633 = vmatpush3.bf16.msra.mxu1 %v671_v44 }
 0x20c   :  { %v263_v36 = vpop.f32.mrb[0].mxu1 }
 0x20d   :  { %v264_v37 = vadd.f32 %v516_v35, %v263_v36  ;;  %v596_v38 = vpop.f32.mrb[1].mxu1 }
 0x20e   :  { %v266_v39 = vpop.f32.mrb[2].mxu1 }
 0x20f   :  { %v269_v40 = vmax.f32 %v264_v37, 0.0  ;;  %v597_v41 = vpop.f32.mrb[3].mxu1 }
 0x211   :  { %v270_v42 = vpack.c.bf16 %v269_v40, %v269_v40 }
 0x213   :  { %615 = vmatmul.mubr.bf16.vlgmr.msra.gmra.mrb[4].mxu0 %v270_v42 }
 0x2e6   :  { %v376_v46 = vpop.f32.mrb[4].mxu0 }
 0x2e7   :  { %v377_v47 = vadd.f32 %v525_v45, %v376_v46  ;;  %v616_v48 = vpop.f32.mrb[5].mxu0 }
 0x2e8   :  { %v379_v49 = vpop.f32.mrb[6].mxu0 }
 0x2e9   :  { %v382_v50 = vmax.f32 %v377_v47, 0.0  ;;  %v617_v51 = vpop.f32.mrb[7].mxu0 }
 0x2eb   :  { %v383_v52 = vpack.c.bf16 %v382_v50, %v382_v50 }
 0x2ed   :  { %635 = vmatmul.mubr.bf16.vlgmr.msra.gmra.mrb[4].mxu1 %v383_v52 }
 0x3c0   :  { %v489_v54 = vpop.f32.mrb[4].mxu1 }
 0x3c1   :  { %v490_v55 = vadd.f32 %v534_v53, %v489_v54  ;;  %v636_v56 = vpop.f32.mrb[5].mxu1 }
 0x3c2   :  { %v492_v57 = vpop.f32.mrb[6].mxu1 }
 0x3c3   :  { %v495_v58 = vmax.f32 %v490_v55, 0.0  ;;  %v637_v59 = vpop.f32.mrb[7].mxu1 }
 0x3c5   :  { %496 = vst [vmem:[#allocation11] sm:$0xff] %v495_v58 }
 0x3c6   :  { %793 = shalt.err (!%p790_p2)
}
 0x3c7   :  { %s794_s8 = scalar_lea.hbm %s1007_s9, 128 }
 0x3c8   :  { %p795_p3 = scmp.ne.s32.totalorder %s1007_s9, %s794_s8  ;;  %p798_p4 = scmp.lt.u32.totalorder %s794_s8, %s1007_s9 }
 0x3ca   :  { %p800_p5 = pnand %p798_p4, %p795_p3 }
 0x3cc   :  { %803 = shalt.err (!%p800_p5)
}
 0x3cd   :  { %506 = dma.vmem_to_hbm [thread:$0]  %s504_s30, 128, %s1007_s9, [#allocation4]  }
 0x3ce   :  { %810 = dma.done.wait [#allocation4], 128  }
 0x3cf   :  { %811 = vsyncadd [#allocation4], 4294967168 }
 0x3d0   :  { %510 = vsyncpa [#allocation3], 1 }
 0x3d1   :  { %511 = vsyncpa [#allocation6], 1 }
 0x3d2   :  { %512 = vsyncpa [#allocation9], 1 }
 0x3d3   :  { %513 = vsyncpa [#allocation4], 1 }

</bundles_post_ra>
